<compile_context>
chip_gen: v7x
topology: tpu7x:2x2x1
jax: 0.10.0
libtpu: 0.0.40
codegen_flags: <defaults>
</compile_context>

<pallas_src>
import functools

import jax
import jax.numpy as jnp
import numpy as np
from jax.experimental import pallas as pl
from jax.experimental.pallas import tpu as pltpu


# Safe on every generation: well below v7x's 64 MiB/TC, comfortable on the
# 128 MiB v5e/v6e parts while still leaving room for compiler scratch.
_VMEM_SOFT_CAP = 48 << 20


def _working_set_bytes(bblk, seq_len, d, compute_bytes):
    """Rough per-grid-step VMEM working set (bytes) for the kernel below."""
    rows = bblk * seq_len
    x_blk = rows * d * 4            # f32 input block (per buffer)
    out_blk = rows * d * 4          # f32 output block (per buffer)
    w_blk = d * 3 * d * compute_bytes   # fused W_qkv, single-buffered
    b_blk = 3 * d * 4                   # fused bias, f32
    qkv = rows * 3 * d * 4              # f32 fused projection temp
    scores = 2 * bblk * seq_len * seq_len * 4   # one head's scores + exp (f32)
    heads = rows * d * 4                        # accumulated per-head outputs
    # x / out blocks are double-buffered by the pipeline; weights are not.
    return 2 * (x_blk + out_blk) + w_blk + b_blk + qkv + scores + heads


def _pick_batch_block(batch, seq_len, d, compute_bytes,
                      target_block_bytes=2 << 20):
    """Largest divisor of `batch` whose working set fits the VMEM soft cap.
    Stop growing once the per-step x block reaches ~target_block_bytes (the
    ~0.35us per-grid-step overhead and the MXU weight push are amortized)."""
    best = 1
    for cand in range(1, batch + 1):
        if batch % cand:
            continue
        if _working_set_bytes(cand, seq_len, d, compute_bytes) > _VMEM_SOFT_CAP:
            break
        best = cand
        if cand * seq_len * d * 4 >= target_block_bytes:
            break
    return best


def _derive_vmem_limit(bblk, seq_len, d, compute_bytes):
    """VMEM limit derived from the working set + headroom, not hard-coded."""
    need = int(1.5 * _working_set_bytes(bblk, seq_len, d, compute_bytes)) + (4 << 20)
    return min(max(need, 32 << 20), _VMEM_SOFT_CAP)


def _attn_kernel(x_ref,       # VMEM (Bblk, S, D)  original (f32) dtype
                 wqkv_ref,    # VMEM (D, 3D)       compute dtype; q-part pre-scaled
                 bqkv_ref,    # VMEM (1, 3D)       f32; q-part pre-scaled
                 o_ref,       # VMEM (Bblk, S, D)  f32
                 *, num_heads, head_dim, seq_len, bblk, exact_softmax):
    d = num_heads * head_dim
    rows = bblk * seq_len
    cdt = wqkv_ref.dtype

    # In-kernel dtype cast (VPU, hidden under the MXU) -- the wrapper does NOT
    # pre-cast x, so HBM traffic for the activations is read-once.
    # NOTE: the (Bblk,S,D)->(Bblk*S,D) flatten is layout-free when S % 8 == 0.
    x = x_ref[...].astype(cdt).reshape(rows, d)

    # Single fused QKV projection (f32 accumulation), bias added in f32.
    qkv = jnp.dot(x, wqkv_ref[...], preferred_element_type=jnp.float32)
    qkv = (qkv + bqkv_ref[...]).reshape(bblk, seq_len, 3 * d)

    head_outs = []
    for h in range(num_heads):  # small static unroll over heads only
        lo = h * head_dim
        # Per-consumer casts keep only small slices live in the compute dtype.
        qh = qkv[:, :, lo:lo + head_dim].astype(cdt)                      # (b,S,hd)
        kh = qkv[:, :, d + lo:d + lo + head_dim].astype(cdt)              # (b,S,hd)
        vh = qkv[:, :, 2 * d + lo:2 * d + lo + head_dim].astype(cdt)      # (b,S,hd)

        # scores = q . k^T batched over the batch-block axis (no K^T relayout);
        # the 1/sqrt(head_dim) scale is folded into W_q/b_q host-side and the
        # module's per-head scalar B is a uniform pre-softmax shift (no-op).
        s = jnp.einsum('bqd,bkd->bqk', qh, kh,
                       preferred_element_type=jnp.float32)                # (b,S,S)

        # Numerically stable softmax in f32.
        s = s - jnp.max(s, axis=-1, keepdims=True)
        e = jnp.exp(s)
        denom = jnp.sum(e, axis=-1, keepdims=True)
        if exact_softmax:
            p = e / denom                                   # exact (f32 verify path)
        else:
            p = e * pl.reciprocal(denom, approx=True)       # EUP slot, VPU stays free

        head_outs.append(jnp.einsum('bqk,bkd->bqd', p.astype(cdt), vh,
                                    preferred_element_type=jnp.float32))  # (b,S,hd)

    # Merge heads once -> single lane-dense (Bblk, S, D) store per grid step.
    o_ref[...] = jnp.concatenate(head_outs, axis=-1).astype(o_ref.dtype)


def self_attention_1d(x, wq, wk, wv, bq, bk, bv, b_head=None, *, num_heads,
                      compute_dtype=jnp.bfloat16):
    """x: (B, S, D).  wq/wk/wv: (D, D) laid out so the projection is x @ W
    (i.e. transpose of torch's nn.Linear weight).  bq/bk/bv: (D,).
    b_head: the module's self.B, shape (1, num_heads, 1, 1) (or (num_heads,)).
    It is a per-head scalar broadcast uniformly over the key axis, hence
    softmax-shift-invariant: dropping it is exact.  This optimization is ONLY
    valid under that broadcast pattern (asserted below)."""
    batch, seq_len, d = x.shape
    assert d % num_heads == 0, "input_dim must be divisible by num_heads"
    head_dim = d // num_heads
    if b_head is not None:
        # Shift-invariance argument requires B to be a per-head scalar.
        assert jnp.asarray(b_head).size == num_heads, \
            "self.B must be one scalar per head (uniform over keys/queries)"
    inv_scale = 1.0 / (float(head_dim) ** 0.5)

    # Fuse QKV; fold the score scale into the Q projection (weights AND bias).
    w_qkv = jnp.concatenate([wq * inv_scale, wk, wv], axis=1).astype(compute_dtype)
    b_qkv = jnp.concatenate([bq * inv_scale, bk, bv]).reshape(1, 3 * d).astype(jnp.float32)

    compute_bytes = jnp.dtype(compute_dtype).itemsize
    bblk = _pick_batch_block(batch, seq_len, d, compute_bytes)
    vmem_limit = _derive_vmem_limit(bblk, seq_len, d, compute_bytes)
    grid = (batch // bblk,)

    exact_softmax = jnp.dtype(compute_dtype) == jnp.dtype(jnp.float32)
    kernel = functools.partial(_attn_kernel, num_heads=num_heads,
                               head_dim=head_dim, seq_len=seq_len, bblk=bblk,
                               exact_softmax=exact_softmax)

    def build(weight_pipeline_mode):
        w_kwargs = {}
        if weight_pipeline_mode is not None:
            w_kwargs = dict(pipeline_mode=weight_pipeline_mode)
        return pl.pallas_call(
            kernel,
            out_shape=jax.ShapeDtypeStruct((batch, seq_len, d), x.dtype),
            grid=grid,
            in_specs=[
                pl.BlockSpec((bblk, seq_len, d), lambda i: (i, 0, 0)),     # x block
                pl.BlockSpec((d, 3 * d), lambda i: (0, 0), **w_kwargs),    # W_qkv
                pl.BlockSpec((1, 3 * d), lambda i: (0, 0), **w_kwargs),    # b_qkv
            ],
            out_specs=pl.BlockSpec((bblk, seq_len, d), lambda i: (i, 0, 0)),
            compiler_params=pltpu.CompilerParams(
                dimension_semantics=("parallel",),
                vmem_limit_bytes=vmem_limit,
            ),
        )

    try:
        # Grid-invariant weight blocks: single-buffer them (double-buffering a
        # constant-index block is pure VMEM waste).
        return build(pl.Buffered(1))(x, w_qkv, b_qkv)
    except Exception:
        # Fallback for JAX builds that reject Buffered(1) on a top-level
        # pallas_call BlockSpec -- semantics are identical.
        return build(None)(x, w_qkv, b_qkv)


def _reference(x, wq, wk, wv, bq, bk, bv, b_head, num_heads):
    """Pure-JAX replica of the PyTorch forward for verification (f32)."""
    batch, seq_len, d = x.shape
    head_dim = d // num_heads
    q = (x @ wq + bq).reshape(batch, seq_len, num_heads, head_dim).transpose(0, 2, 1, 3)
    k = (x @ wk + bk).reshape(batch, seq_len, num_heads, head_dim).transpose(0, 2, 1, 3)
    v = (x @ wv + bv).reshape(batch, seq_len, num_heads, head_dim).transpose(0, 2, 1, 3)
    scores = jnp.einsum("bhqd,bhkd->bhqk", q, k) / (head_dim ** 0.5)
    scores = scores + b_head.reshape(1, num_heads, 1, 1)
    w = jax.nn.softmax(scores, axis=-1)
    out = jnp.einsum("bhqk,bhkd->bhqd", w, v)
    return out.transpose(0, 2, 1, 3).reshape(batch, seq_len, d)


if __name__ == "__main__":
    # Small shapes consistent with the module: batch=2, seq=8, input_dim=32, heads=2
    batch, seq_len, input_dim, num_heads = 2, 8, 32, 2

    key = jax.random.PRNGKey(0)
    kx, kq, kk, kv, kbq, kbk, kbv, kB = jax.random.split(key, 8)

    x = jax.random.normal(kx, (batch, seq_len, input_dim), dtype=jnp.float32)
    wq = jax.random.normal(kq, (input_dim, input_dim), dtype=jnp.float32) * 0.1
    wk = jax.random.normal(kk, (input_dim, input_dim), dtype=jnp.float32) * 0.1
    wv = jax.random.normal(kv, (input_dim, input_dim), dtype=jnp.float32) * 0.1
    bq = jax.random.normal(kbq, (input_dim,), dtype=jnp.float32) * 0.1
    bk = jax.random.normal(kbk, (input_dim,), dtype=jnp.float32) * 0.1
    bv = jax.random.normal(kbv, (input_dim,), dtype=jnp.float32) * 0.1
    # torch inits self.B to zeros; use non-zero values here to exercise the
    # shift-invariance argument in the verification.
    b_head = jax.random.normal(kB, (num_heads,), dtype=jnp.float32) * 0.1

    ref = _reference(x, wq, wk, wv, bq, bk, bv, b_head, num_heads)

    # 1) f32 compute path: exact softmax divide, tight numerical check.
    out_f32 = self_attention_1d(x, wq, wk, wv, bq, bk, bv, b_head,
                                num_heads=num_heads, compute_dtype=jnp.float32)
    out_f32 = jax.block_until_ready(out_f32)
    assert out_f32.shape == (batch, seq_len, input_dim)
    np.testing.assert_allclose(np.asarray(out_f32), np.asarray(ref),
                               atol=1e-4, rtol=1e-4)

    # 2) bf16 MXU path (default / fastest): looser tolerance due to bf16 inputs.
    out_bf16 = self_attention_1d(x, wq, wk, wv, bq, bk, bv, b_head,
                                 num_heads=num_heads, compute_dtype=jnp.bfloat16)
    out_bf16 = jax.block_until_ready(out_bf16)
    assert out_bf16.shape == (batch, seq_len, input_dim)
    np.testing.assert_allclose(np.asarray(out_bf16), np.asarray(ref),
                               atol=5e-2, rtol=5e-2)

    print("KERNEL_OK")
</pallas_src>

<mosaic_0001>
module attributes {stable_mosaic.version = 11 : i64} {
  func.func @_attn_kernel(%arg0: i32, %arg1: memref<2x8x32xf32, #tpu.memory_space<vmem>>, %arg2: memref<32x96xf32, #tpu.memory_space<vmem>>, %arg3: memref<1x96xf32, #tpu.memory_space<vmem>>, %arg4: memref<2x8x32xf32, #tpu.memory_space<vmem>>) attributes {dimension_semantics = [#tpu.dimension_semantics<parallel>], iteration_bounds = array<i64: 1>, scalar_prefetch = 0 : i64, scratch_operands = 0 : i64, tpu.core_type = #tpu.core_type<tc>, window_params = [{transform_indices = @transform_0, window_bounds = array<i64: 2, 8, 32>}, {pipeline_mode = #tpu.pipeline_mode<synchronous>, transform_indices = @transform_1, window_bounds = array<i64: 32, 96>}, {pipeline_mode = #tpu.pipeline_mode<synchronous>, transform_indices = @transform_2, window_bounds = array<i64: 1, 96>}, {transform_indices = @transform_3, window_bounds = array<i64: 2, 8, 32>}]} {
    %c0 = arith.constant 0 : index
    %c0_0 = arith.constant 0 : index
    %c0_1 = arith.constant 0 : index
    %0 = vector.load %arg1[%c0, %c0_0, %c0_1] : memref<2x8x32xf32, #tpu.memory_space<vmem>>, vector<2x8x32xf32>
    %1 = vector.shape_cast %0 : vector<2x8x32xf32> to vector<16x32xf32>
    %c0_2 = arith.constant 0 : index
    %c0_3 = arith.constant 0 : index
    %2 = vector.load %arg2[%c0_2, %c0_3] : memref<32x96xf32, #tpu.memory_space<vmem>>, vector<32x96xf32>
    %cst = arith.constant dense<0.000000e+00> : vector<16x96xf32>
    %3 = tpu.matmul %1, %2, %cst {dimension_numbers = #tpu.dot_dimension_numbers<[1], [0], [0], [1], [0, 0, 1, 1], [], []>} : vector<16x32xf32>, vector<32x96xf32>, vector<16x96xf32> -> vector<16x96xf32>
    %c0_4 = arith.constant 0 : index
    %c0_5 = arith.constant 0 : index
    %4 = vector.load %arg3[%c0_4, %c0_5] : memref<1x96xf32, #tpu.memory_space<vmem>>, vector<1x96xf32>
    %5 = vector.broadcast %4 : vector<1x96xf32> to vector<16x96xf32>
    %6 = arith.addf %3, %5 : vector<16x96xf32>
    %7 = vector.shape_cast %6 : vector<16x96xf32> to vector<2x8x96xf32>
    %8 = vector.extract_strided_slice %7 {offsets = [0, 0, 0], sizes = [2, 8, 16], strides = [1, 1, 1]} : vector<2x8x96xf32> to vector<2x8x16xf32>
    %9 = vector.extract_strided_slice %7 {offsets = [0, 0, 32], sizes = [2, 8, 16], strides = [1, 1, 1]} : vector<2x8x96xf32> to vector<2x8x16xf32>
    %10 = vector.extract_strided_slice %7 {offsets = [0, 0, 64], sizes = [2, 8, 16], strides = [1, 1, 1]} : vector<2x8x96xf32> to vector<2x8x16xf32>
    "tpu.trace_start"() <{level = 10 : i32, message = "bqd,bkd->bqk"}> : () -> ()
    %cst_6 = arith.constant dense<0.000000e+00> : vector<2x8x8xf32>
    %11 = tpu.matmul %8, %9, %cst_6 {dimension_numbers = #tpu.dot_dimension_numbers<[2], [2], [1], [1], [0, 0, 0, 1, 1, 1], [0], [0]>} : vector<2x8x16xf32>, vector<2x8x16xf32>, vector<2x8x8xf32> -> vector<2x8x8xf32>
    "tpu.trace_stop"() : () -> ()
    %cst_7 = arith.constant dense<0xFF800000> : vector<2x8xf32>
    %12 = vector.multi_reduction <maximumf>, %11, %cst_7 [2] : vector<2x8x8xf32> to vector<2x8xf32>
    %13 = vector.shape_cast %12 : vector<2x8xf32> to vector<2x8x1xf32>
    %14 = vector.broadcast %13 : vector<2x8x1xf32> to vector<2x8x8xf32>
    %15 = arith.subf %11, %14 : vector<2x8x8xf32>
    %16 = math.exp %15 : vector<2x8x8xf32>
    %cst_8 = arith.constant dense<0.000000e+00> : vector<2x8xf32>
    %17 = vector.multi_reduction <add>, %16, %cst_8 [2] : vector<2x8x8xf32> to vector<2x8xf32>
    %18 = vector.shape_cast %17 : vector<2x8xf32> to vector<2x8x1xf32>
    %19 = vector.broadcast %18 : vector<2x8x1xf32> to vector<2x8x8xf32>
    %20 = arith.divf %16, %19 : vector<2x8x8xf32>
    "tpu.trace_start"() <{level = 10 : i32, message = "bqk,bkd->bqd"}> : () -> ()
    %cst_9 = arith.constant dense<0.000000e+00> : vector<2x8x16xf32>
    %21 = tpu.matmul %20, %10, %cst_9 {dimension_numbers = #tpu.dot_dimension_numbers<[2], [1], [1], [2], [0, 0, 0, 1, 1, 2], [0], [0]>} : vector<2x8x8xf32>, vector<2x8x16xf32>, vector<2x8x16xf32> -> vector<2x8x16xf32>
    "tpu.trace_stop"() : () -> ()
    %22 = vector.extract_strided_slice %7 {offsets = [0, 0, 16], sizes = [2, 8, 16], strides = [1, 1, 1]} : vector<2x8x96xf32> to vector<2x8x16xf32>
    %23 = vector.extract_strided_slice %7 {offsets = [0, 0, 48], sizes = [2, 8, 16], strides = [1, 1, 1]} : vector<2x8x96xf32> to vector<2x8x16xf32>
    %24 = vector.extract_strided_slice %7 {offsets = [0, 0, 80], sizes = [2, 8, 16], strides = [1, 1, 1]} : vector<2x8x96xf32> to vector<2x8x16xf32>
    "tpu.trace_start"() <{level = 10 : i32, message = "bqd,bkd->bqk"}> : () -> ()
    %cst_10 = arith.constant dense<0.000000e+00> : vector<2x8x8xf32>
    %25 = tpu.matmul %22, %23, %cst_10 {dimension_numbers = #tpu.dot_dimension_numbers<[2], [2], [1], [1], [0, 0, 0, 1, 1, 1], [0], [0]>} : vector<2x8x16xf32>, vector<2x8x16xf32>, vector<2x8x8xf32> -> vector<2x8x8xf32>
    "tpu.trace_stop"() : () -> ()
    %cst_11 = arith.constant dense<0xFF800000> : vector<2x8xf32>
    %26 = vector.multi_reduction <maximumf>, %25, %cst_11 [2] : vector<2x8x8xf32> to vector<2x8xf32>
    %27 = vector.shape_cast %26 : vector<2x8xf32> to vector<2x8x1xf32>
    %28 = vector.broadcast %27 : vector<2x8x1xf32> to vector<2x8x8xf32>
    %29 = arith.subf %25, %28 : vector<2x8x8xf32>
    %30 = math.exp %29 : vector<2x8x8xf32>
    %cst_12 = arith.constant dense<0.000000e+00> : vector<2x8xf32>
    %31 = vector.multi_reduction <add>, %30, %cst_12 [2] : vector<2x8x8xf32> to vector<2x8xf32>
    %32 = vector.shape_cast %31 : vector<2x8xf32> to vector<2x8x1xf32>
    %33 = vector.broadcast %32 : vector<2x8x1xf32> to vector<2x8x8xf32>
    %34 = arith.divf %30, %33 : vector<2x8x8xf32>
    "tpu.trace_start"() <{level = 10 : i32, message = "bqk,bkd->bqd"}> : () -> ()
    %cst_13 = arith.constant dense<0.000000e+00> : vector<2x8x16xf32>
    %35 = tpu.matmul %34, %24, %cst_13 {dimension_numbers = #tpu.dot_dimension_numbers<[2], [1], [1], [2], [0, 0, 0, 1, 1, 2], [0], [0]>} : vector<2x8x8xf32>, vector<2x8x16xf32>, vector<2x8x16xf32> -> vector<2x8x16xf32>
    "tpu.trace_stop"() : () -> ()
    %36 = tpu.concatenate %21, %35 in 2 : vector<2x8x16xf32>, vector<2x8x16xf32> -> vector<2x8x32xf32>
    %c0_14 = arith.constant 0 : index
    %c0_15 = arith.constant 0 : index
    %c0_16 = arith.constant 0 : index
    %37 = vector.load %arg4[%c0_14, %c0_15, %c0_16] : memref<2x8x32xf32, #tpu.memory_space<vmem>>, vector<2x8x32xf32>
    tpu.vector_store %arg4[%c0_14, %c0_15, %c0_16], %36 {strides = array<i32>} : memref<2x8x32xf32, #tpu.memory_space<vmem>>, vector<2x8x32xf32>,
    return
  }
  func.func @transform_0(%arg0: i32) -> (i32, i32, i32) {
    %c0_i32 = arith.constant 0 : i32
    %c0_i32_0 = arith.constant 0 : i32
    %c0_i32_1 = arith.constant 0 : i32
    return %arg0, %c0_i32, %c0_i32_0 : i32, i32, i32
  }
  func.func @transform_1(%arg0: i32) -> (i32, i32) {
    %c0_i32 = arith.constant 0 : i32
    %c0_i32_0 = arith.constant 0 : i32
    %c0_i32_1 = arith.constant 0 : i32
    return %c0_i32, %c0_i32_0 : i32, i32
  }
  func.func @transform_2(%arg0: i32) -> (i32, i32) {
    %c0_i32 = arith.constant 0 : i32
    %c0_i32_0 = arith.constant 0 : i32
    %c0_i32_1 = arith.constant 0 : i32
    return %c0_i32, %c0_i32_0 : i32, i32
  }
  func.func @transform_3(%arg0: i32) -> (i32, i32, i32) {
    %c0_i32 = arith.constant 0 : i32
    %c0_i32_0 = arith.constant 0 : i32
    %c0_i32_1 = arith.constant 0 : i32
    return %arg0, %c0_i32, %c0_i32_0 : i32, i32, i32
  }
}

module attributes {stable_mosaic.version = 11 : i64} {
  func.func @_attn_kernel(%arg0: i32, %arg1: memref<2x8x32xf32, #tpu.memory_space<vmem>>, %arg2: memref<32x96xf32, #tpu.memory_space<vmem>>, %arg3: memref<1x96xf32, #tpu.memory_space<vmem>>, %arg4: memref<2x8x32xf32, #tpu.memory_space<vmem>>) attributes {dimension_semantics = [#tpu.dimension_semantics<parallel>], iteration_bounds = array<i64: 1>, scalar_prefetch = 0 : i64, scratch_operands = 0 : i64, tpu.core_type = #tpu.core_type<tc>, window_params = [{transform_indices = @transform_0, window_bounds = array<i64: 2, 8, 32>}, {pipeline_mode = #tpu.pipeline_mode<synchronous>, transform_indices = @transform_1, window_bounds = array<i64: 32, 96>}, {pipeline_mode = #tpu.pipeline_mode<synchronous>, transform_indices = @transform_2, window_bounds = array<i64: 1, 96>}, {transform_indices = @transform_3, window_bounds = array<i64: 2, 8, 32>}]} {
    %c0 = arith.constant 0 : index
    %c0_0 = arith.constant 0 : index
    %c0_1 = arith.constant 0 : index
    %0 = vector.load %arg1[%c0, %c0_0, %c0_1] : memref<2x8x32xf32, #tpu.memory_space<vmem>>, vector<2x8x32xf32>
    %1 = vector.shape_cast %0 : vector<2x8x32xf32> to vector<16x32xf32>
    %c0_2 = arith.constant 0 : index
    %c0_3 = arith.constant 0 : index
    %2 = vector.load %arg2[%c0_2, %c0_3] : memref<32x96xf32, #tpu.memory_space<vmem>>, vector<32x96xf32>
    %cst = arith.constant dense<0.000000e+00> : vector<16x96xf32>
    %3 = tpu.matmul %1, %2, %cst {dimension_numbers = #tpu.dot_dimension_numbers<[1], [0], [0], [1], [0, 0, 1, 1], [], []>} : vector<16x32xf32>, vector<32x96xf32>, vector<16x96xf32> -> vector<16x96xf32>
    %c0_4 = arith.constant 0 : index
    %c0_5 = arith.constant 0 : index
    %4 = vector.load %arg3[%c0_4, %c0_5] : memref<1x96xf32, #tpu.memory_space<vmem>>, vector<1x96xf32>
    %5 = vector.broadcast %4 : vector<1x96xf32> to vector<16x96xf32>
    %6 = arith.addf %3, %5 : vector<16x96xf32>
    %7 = vector.shape_cast %6 : vector<16x96xf32> to vector<2x8x96xf32>
    %8 = vector.extract_strided_slice %7 {offsets = [0, 0, 0], sizes = [2, 8, 16], strides = [1, 1, 1]} : vector<2x8x96xf32> to vector<2x8x16xf32>
    %9 = vector.extract_strided_slice %7 {offsets = [0, 0, 32], sizes = [2, 8, 16], strides = [1, 1, 1]} : vector<2x8x96xf32> to vector<2x8x16xf32>
    %10 = vector.extract_strided_slice %7 {offsets = [0, 0, 64], sizes = [2, 8, 16], strides = [1, 1, 1]} : vector<2x8x96xf32> to vector<2x8x16xf32>
    "tpu.trace_start"() <{level = 10 : i32, message = "bqd,bkd->bqk"}> : () -> ()
    %cst_6 = arith.constant dense<0.000000e+00> : vector<2x8x8xf32>
    %11 = tpu.matmul %8, %9, %cst_6 {dimension_numbers = #tpu.dot_dimension_numbers<[2], [2], [1], [1], [0, 0, 0, 1, 1, 1], [0], [0]>} : vector<2x8x16xf32>, vector<2x8x16xf32>, vector<2x8x8xf32> -> vector<2x8x8xf32>
    "tpu.trace_stop"() : () -> ()
    %cst_7 = arith.constant dense<0xFF800000> : vector<2x8xf32>
    %12 = vector.multi_reduction <maximumf>, %11, %cst_7 [2] : vector<2x8x8xf32> to vector<2x8xf32>
    %13 = vector.shape_cast %12 : vector<2x8xf32> to vector<2x8x1xf32>
    %14 = vector.broadcast %13 : vector<2x8x1xf32> to vector<2x8x8xf32>
    %15 = arith.subf %11, %14 : vector<2x8x8xf32>
    %16 = math.exp %15 : vector<2x8x8xf32>
    %cst_8 = arith.constant dense<0.000000e+00> : vector<2x8xf32>
    %17 = vector.multi_reduction <add>, %16, %cst_8 [2] : vector<2x8x8xf32> to vector<2x8xf32>
    %18 = vector.shape_cast %17 : vector<2x8xf32> to vector<2x8x1xf32>
    %19 = vector.broadcast %18 : vector<2x8x1xf32> to vector<2x8x8xf32>
    %20 = arith.divf %16, %19 : vector<2x8x8xf32>
    "tpu.trace_start"() <{level = 10 : i32, message = "bqk,bkd->bqd"}> : () -> ()
    %cst_9 = arith.constant dense<0.000000e+00> : vector<2x8x16xf32>
    %21 = tpu.matmul %20, %10, %cst_9 {dimension_numbers = #tpu.dot_dimension_numbers<[2], [1], [1], [2], [0, 0, 0, 1, 1, 2], [0], [0]>} : vector<2x8x8xf32>, vector<2x8x16xf32>, vector<2x8x16xf32> -> vector<2x8x16xf32>
    "tpu.trace_stop"() : () -> ()
    %22 = vector.extract_strided_slice %7 {offsets = [0, 0, 16], sizes = [2, 8, 16], strides = [1, 1, 1]} : vector<2x8x96xf32> to vector<2x8x16xf32>
    %23 = vector.extract_strided_slice %7 {offsets = [0, 0, 48], sizes = [2, 8, 16], strides = [1, 1, 1]} : vector<2x8x96xf32> to vector<2x8x16xf32>
    %24 = vector.extract_strided_slice %7 {offsets = [0, 0, 80], sizes = [2, 8, 16], strides = [1, 1, 1]} : vector<2x8x96xf32> to vector<2x8x16xf32>
    "tpu.trace_start"() <{level = 10 : i32, message = "bqd,bkd->bqk"}> : () -> ()
    %cst_10 = arith.constant dense<0.000000e+00> : vector<2x8x8xf32>
    %25 = tpu.matmul %22, %23, %cst_10 {dimension_numbers = #tpu.dot_dimension_numbers<[2], [2], [1], [1], [0, 0, 0, 1, 1, 1], [0], [0]>} : vector<2x8x16xf32>, vector<2x8x16xf32>, vector<2x8x8xf32> -> vector<2x8x8xf32>
    "tpu.trace_stop"() : () -> ()
    %cst_11 = arith.constant dense<0xFF800000> : vector<2x8xf32>
    %26 = vector.multi_reduction <maximumf>, %25, %cst_11 [2] : vector<2x8x8xf32> to vector<2x8xf32>
    %27 = vector.shape_cast %26 : vector<2x8xf32> to vector<2x8x1xf32>
    %28 = vector.broadcast %27 : vector<2x8x1xf32> to vector<2x8x8xf32>
    %29 = arith.subf %25, %28 : vector<2x8x8xf32>
    %30 = math.exp %29 : vector<2x8x8xf32>
    %cst_12 = arith.constant dense<0.000000e+00> : vector<2x8xf32>
    %31 = vector.multi_reduction <add>, %30, %cst_12 [2] : vector<2x8x8xf32> to vector<2x8xf32>
    %32 = vector.shape_cast %31 : vector<2x8xf32> to vector<2x8x1xf32>
    %33 = vector.broadcast %32 : vector<2x8x1xf32> to vector<2x8x8xf32>
    %34 = arith.divf %30, %33 : vector<2x8x8xf32>
    "tpu.trace_start"() <{level = 10 : i32, message = "bqk,bkd->bqd"}> : () -> ()
    %cst_13 = arith.constant dense<0.000000e+00> : vector<2x8x16xf32>
    %35 = tpu.matmul %34, %24, %cst_13 {dimension_numbers = #tpu.dot_dimension_numbers<[2], [1], [1], [2], [0, 0, 0, 1, 1, 2], [0], [0]>} : vector<2x8x8xf32>, vector<2x8x16xf32>, vector<2x8x16xf32> -> vector<2x8x16xf32>
    "tpu.trace_stop"() : () -> ()
    %36 = tpu.concatenate %21, %35 in 2 : vector<2x8x16xf32>, vector<2x8x16xf32> -> vector<2x8x32xf32>
    %c0_14 = arith.constant 0 : index
    %c0_15 = arith.constant 0 : index
    %c0_16 = arith.constant 0 : index
    %37 = vector.load %arg4[%c0_14, %c0_15, %c0_16] : memref<2x8x32xf32, #tpu.memory_space<vmem>>, vector<2x8x32xf32>
    tpu.vector_store %arg4[%c0_14, %c0_15, %c0_16], %36 {strides = array<i32>} : memref<2x8x32xf32, #tpu.memory_space<vmem>>, vector<2x8x32xf32>,
    return
  }
  func.func @transform_0(%arg0: i32) -> (i32, i32, i32) {
    %c0_i32 = arith.constant 0 : i32
    %c0_i32_0 = arith.constant 0 : i32
    %c0_i32_1 = arith.constant 0 : i32
    return %arg0, %c0_i32, %c0_i32_0 : i32, i32, i32
  }
  func.func @transform_1(%arg0: i32) -> (i32, i32) {
    %c0_i32 = arith.constant 0 : i32
    %c0_i32_0 = arith.constant 0 : i32
    %c0_i32_1 = arith.constant 0 : i32
    return %c0_i32, %c0_i32_0 : i32, i32
  }
  func.func @transform_2(%arg0: i32) -> (i32, i32) {
    %c0_i32 = arith.constant 0 : i32
    %c0_i32_0 = arith.constant 0 : i32
    %c0_i32_1 = arith.constant 0 : i32
    return %c0_i32, %c0_i32_0 : i32, i32
  }
  func.func @transform_3(%arg0: i32) -> (i32, i32, i32) {
    %c0_i32 = arith.constant 0 : i32
    %c0_i32_0 = arith.constant 0 : i32
    %c0_i32_1 = arith.constant 0 : i32
    return %arg0, %c0_i32, %c0_i32_0 : i32, i32, i32
  }
}

</mosaic_0001>

<bundles_post_ra>
// kernel: tpu_custom_call.1
= control target key start
LH: loop header
LB: loop body
LE: loop exit
PB: predicated region body
PF: predicated region fallthrough
CT: control target
= control target key end

     0   :  { %8 = vsyncpa [#allocation3], 0  ;;  %s1172_s0 = inlined_call_operand.hbm [shape: f32[2,8,32], index: 0, kind: input, shape index: {}]   ;;  %s1173_s1 = inlined_call_operand.hbm [shape: f32[32,96], index: 1, kind: input, shape index: {}]   ;;  %s1174_s2 = inlined_call_operand.vmem [shape: f32[1,96], index: 2, kind: input, shape index: {}]   ;;  %s1175_s3 = inlined_call_operand.hbm [shape: f32[2,8,32], index: 3, kind: output, shape index: {}]  }
   0x1   :  { %9 = vsyncpa [#allocation6], 0 }
   0x2   :  { %10 = vsyncpa [#allocation4], 0  ;;  %s1025_s12 = smov [#allocation2]   ;;  %s953_s16 = scalar_lea.hbm %s1172_s0, 256 }
   0x3   :  { %s16_s13 = sshll.u32 %s1025_s12, 4  ;;  %p954_p0 = scmp.ne.s32.totalorder %s1172_s0, %s953_s16  ;;  %s17_s13 = int_to_ptr.vmem [resolvable:$true] %s16_s13 }
   0x4   :  { %p957_p1 = scmp.lt.u32.totalorder %s953_s16, %s1172_s0 }
   0x6   :  { %p959_p2 = pnand %p957_p1, %p954_p0 }
   0x8   :  { %962 = shalt.err (!%p959_p2)
}
   0x9   :  { %s963_s21 = scalar_lea.vmem %s17_s13, 256  ;;  %p968_p4 = scmp.lt.s32.totalorder %s17_s13, %s17_s13 }
   0xa   :  { %p964_p3 = scmp.ne.s32.totalorder %s17_s13, %s963_s21  ;;  %p969_p5 = scmp.lt.s32.totalorder %s963_s21, %s963_s21 }
   0xc   :  { %p970_p6 = por %p969_p5, %p968_p4 }
   0xe   :  { %p971_p7 = pnand %p970_p6, %p964_p3 }
  0x10   :  { %974 = shalt.err (!%p971_p7)
}
  0x11   :  { %s1026_s22 = smov 128   ;;  %s1027_s23 = smov 8  }
  0x12   :  { %22 = dma.hbm_to_vmem [thread:$0]  %s1172_s0, 256, %s17_s13, [#allocation3], %s1026_s22, %s1026_s22, %s1027_s23  }
  0x13   :  { %s1028_s26 = smov [#allocation5]   ;;  %s975_s30 = scalar_lea.hbm %s1173_s1, 512 }
  0x14   :  { %s28_s27 = sshll.u32 %s1028_s26, 4  ;;  %p976_p8 = scmp.ne.s32.totalorder %s1173_s1, %s975_s30  ;;  %s29_s27 = int_to_ptr.vmem [resolvable:$true] %s28_s27 }
  0x15   :  { %p979_p9 = scmp.lt.u32.totalorder %s975_s30, %s1173_s1 }
  0x17   :  { %p981_p10 = pnand %p979_p9, %p976_p8 }
  0x19   :  { %984 = shalt.err (!%p981_p10)
}
  0x1a   :  { %s985_s8 = scalar_lea.vmem %s29_s27, 512  ;;  %p990_p12 = scmp.lt.s32.totalorder %s29_s27, %s29_s27 }
  0x1b   :  { %p986_p11 = scmp.ne.s32.totalorder %s29_s27, %s985_s8  ;;  %p991_p13 = scmp.lt.s32.totalorder %s985_s8, %s985_s8 }
  0x1d   :  { %p992_p0 = por %p991_p13, %p990_p12 }
  0x1f   :  { %p993_p1 = pnand %p992_p0, %p986_p11 }
  0x21   :  { %996 = shalt.err (!%p993_p1)
}
  0x22   :  { %34 = dma.hbm_to_vmem [thread:$0]  %s1173_s1, 512, %s29_s27, [#allocation6], %s1026_s22, %s1026_s22, %s1027_s23  }
  0x23   :  { %1019 = dma.done.wait [#allocation3], 256  }
  0x24   :  { %1020 = vsyncadd [#allocation3], 4294967040 }
  0x25   :  { %1021 = dma.done.wait [#allocation6], 512  }
  0x26   :  { %1022 = vsyncadd [#allocation6], 4294966784  ;;  %vm56_vm0 = vcmask 261120   ;;  %v45_v0 = vld [vmem:[#allocation5] sm:$0xff]  ;;  %v46_v1 = vld [vmem:[#allocation5 + $0x8] sm:$0xff]  ;;  %v1029_v8 = vmov 0.0  }
  0x27   :  { %v47_v2 = vld [vmem:[#allocation5 + $0x10] sm:$0xff]  ;;  %v916_v3 = vpack.c.bf16 %v46_v1, %v45_v0  ;;  %v48_v4 = vld [vmem:[#allocation5 + $0x18] sm:$0xff]  ;;  %876 = vmatprep.subr.mxu1 %v1029_v8  ;;  %vm1030_vm1 = vmmov 0   ;;  %s1031_s11 = smov 96   ;;  %vm141_vm2 = vcmask 130048   ;;  %vm293_vm3 = vcmask 64512  }
  0x28   :  { %v43_v5 = vld [vmem:[#allocation2] sm:$0xff]  ;;  %v920_v6 = vpack.c.bf16 %v48_v4, %v47_v2  ;;  %v44_v7 = vld [vmem:[#allocation2 + $0x8] sm:$0xff]  ;;  %878 = vmatprep.mubr.msk.f32.mxu1 %vm1030_vm1, %v1029_v8  ;;  %s1033_s12 = smov 80   ;;  %s1034_s13 = smov 112  }
  0x29   :  { %873 = vmatprep.mubr.msk.f32.mxu0 %vm56_vm0, %v43_v5  ;;  %917 = vmatprep.subr.bf16.mxu0 %v916_v3  ;;  %v828_v9 = vld [vmem:[%s1174_s2] ss:$0 sm:$0xff]  ;;  %s1032_s2 = smov 64   ;;  %s1035_s14 = smov 48  }
  0x2a   :  { %919 = vmatpush3.bf16.msra.mxu0 %v916_v3  ;;  %s1036_s15 = smov 16   ;;  %s1037_s16 = smov [#allocation7]  }
  0x2b   :  { %921 = vmatprep.subr.bf16.mxu0 %v920_v6  ;;  %s815_s17 = sshll.u32 %s1037_s16, 4  ;;  %s816_s17 = int_to_ptr.vmem [resolvable:$true] %s815_s17 }
  0x2c   :  { %s997_s18 = scalar_lea.vmem %s816_s17, 256  ;;  %p1002_p3 = scmp.lt.s32.totalorder %s816_s17, %s816_s17 }
  0x2d   :  { %p998_p2 = scmp.ne.s32.totalorder %s816_s17, %s997_s18  ;;  %p1003_p4 = scmp.lt.s32.totalorder %s997_s18, %s997_s18 }
  0x2e   :  { %923 = vmatpush3.bf16.msra.mxu0 %v920_v6 }
  0x2f   :  { %886 = vmatprep.subr.mxu0 %v1029_v8  ;;  %p1004_p5 = por %p1003_p4, %p1002_p3 }
  0x31   :  { %874 = vmatmul.mubr.msk.f32.vlgmr.msra.gmra.mrb[0].mxu0 %vm56_vm0, %v44_v7  ;;  %p1005_p6 = pnand %p1004_p5, %p998_p2 }
  0x32   :  { %888 = vmatprep.mubr.msk.f32.mxu0 %vm1030_vm1, %v1029_v8 }
 0x104   :  { %v875_v10 = vpop.f32.mrb[0].mxu0 }
 0x105   :  { %v129_v11 = vpop.f32.mrb[1].mxu0  ;;  %v1102_v13 = vadd.f32 %v875_v10, %v828_v9 }
 0x106   :  { %v1099_v12 = vadd.f32 %v828_v9, %v129_v11 }
 0x108   :  { %139 = vrot.lane.b32.xlu0 %v1099_v12, %s1031_s11 }
 0x10c   :  { %217 = vrot.lane.b32.xlu0 %v1102_v13, %s1031_s11 }
 0x17a   :  { %v140_v14 = vpop.permute.xlu0 %139 }
 0x17b   :  { %877 = vmatpush3.xpose.msk.msra.mxu1 %vm141_vm2, %v140_v14 }
 0x17c   :  { %881 = vmatprep.subr.mxu1 %v1029_v8 }
 0x17e   :  { %879 = vmatmul.mubr.msk.f32.vlgmr.msra.gmra.mrb[0].mxu1 %vm141_vm2, %v1099_v12  ;;  %v218_v15 = vpop.permute.xlu0 %217 }
 0x17f   :  { %882 = vmatpush3.xpose.msk.msra.mxu1 %vm141_vm2, %v218_v15  ;;  %883 = vmatprep.mubr.msk.f32.mxu1 %vm1030_vm1, %v1029_v8 }
 0x180   :  { %891 = vmatprep.subr.mxu1 %v1029_v8 }
 0x182   :  { %884 = vmatmul.mubr.msk.f32.vlgmr.msra.gmra.mrb[2].mxu1 %vm141_vm2, %v1102_v13 }
 0x183   :  { %893 = vmatprep.mubr.msk.f32.mxu1 %vm1030_vm1, %v1029_v8 }
 0x251   :  { %v212_v16 = vpop.f32.mrb[0].mxu1 }
 0x252   :  { %v880_v17 = vpop.f32.mrb[1].mxu1  ;;  %v294_v18 = vsel %vm293_vm3, %v212_v16, -inf }
 0x253   :  { %295 = vmax.xlane.f32.xlu1 %v294_v18 }
 0x255   :  { %v289_v19 = vpop.f32.mrb[2].mxu1 }
 0x256   :  { %v885_v20 = vpop.f32.mrb[3].mxu1  ;;  %v297_v21 = vsel %vm293_vm3, %v289_v19, -inf }
 0x257   :  { %298 = vmax.xlane.f32.xlu1 %v297_v21 }
 0x268   :  { %316 = vrot.lane.b32.xlu1 %v1099_v12, %s1032_s2 }
 0x26c   :  { %392 = vrot.lane.b32.xlu1 %v1102_v13, %s1032_s2 }
 0x270   :  { %470 = vrot.lane.b32.xlu1 %v1099_v12, %s1033_s12 }
 0x274   :  { %548 = vrot.lane.b32.xlu1 %v1102_v13, %s1033_s12 }
 0x2e0   :  { %v296_v22 = vpop.xlane.xlu1 %295 }
 0x2e1   :  { %v300_v23 = vsub.f32 %v212_v16, %v296_v22 }
 0x2e3   :  { %v302_v24 = vmul.f32 1.442695, %v300_v23 }
 0x2e4   :  { %v299_v25 = vpop.xlane.xlu1 %298 }
 0x2e5   :  { %937 = vpow2.f32 %v302_v24  ;;  %v301_v26 = vsub.f32 %v289_v19, %v299_v25 }
 0x2e7   :  { %v304_v27 = vmul.f32 1.442695, %v301_v26 }
 0x2e8   :  { %v317_v28 = vpop.permute.xlu1 %316 }
 0x2e9   :  { %939 = vpow2.f32 %v304_v27  ;;  %887 = vmatpush3.msra.mxu0 %v317_v28 }
 0x2ea   :  { %896 = vmatprep.subr.mxu0 %v1029_v8 }
 0x2ec   :  { %v393_v29 = vpop.permute.xlu1 %392 }
 0x2ed   :  { %892 = vmatpush3.msra.mxu1 %v393_v29 }
 0x2ee   :  { %901 = vmatprep.subr.mxu1 %v1029_v8 }
 0x2ef   :  { %v938_v30 = vpop.eup %937 }
 0x2f0   :  { %v306_v31 = vsel %vm293_vm3, %v938_v30, 0.0  ;;  %v471_v34 = vpop.permute.xlu1 %470 }
 0x2f1   :  { %307 = vadd.xlane.f32.xlu0 %v306_v31 }
 0x2f3   :  { %v940_v32 = vpop.eup %939 }
 0x2f4   :  { %v309_v33 = vsel %vm293_vm3, %v940_v32, 0.0  ;;  %v549_v35 = vpop.permute.xlu1 %548 }
 0x2f5   :  { %310 = vadd.xlane.f32.xlu1 %v309_v33 }
 0x306   :  { %546 = vrot.lane.b32.xlu1 %v1102_v13, %s1034_s13 }
 0x307   :  { %468 = vrot.lane.b32.xlu0 %v1099_v12, %s1034_s13 }
 0x37e   :  { %v308_v36 = vpop.xlane.xlu0 %307 }
 0x37f   :  { %941 = vrcp.f32 %v308_v36 }
 0x382   :  { %v311_v37 = vpop.xlane.xlu1 %310  ;;  %v469_v42 = vpop.permute.xlu0 %468 }
 0x383   :  { %943 = vrcp.f32 %v311_v37 }
 0x386   :  { %v547_v43 = vpop.permute.xlu1 %546 }
 0x389   :  { %v942_v38 = vpop.eup %941 }
 0x38a   :  { %v313_v39 = vmul.f32 %v942_v38, %v938_v30 }
 0x38c   :  { %889 = vmatmul.mubr.msk.f32.vlgmr.msra.gmra.mrb[2].mxu0 %vm293_vm3, %v313_v39 }
 0x38d   :  { %v944_v40 = vpop.eup %943  ;;  %897 = vmatpush3.xpose.msk.msra.mxu0 %vm141_vm2, %v471_v34  ;;  %898 = vmatprep.mubr.msk.f32.mxu0 %vm1030_vm1, %v1029_v8 }
 0x38e   :  { %v315_v41 = vmul.f32 %v944_v40, %v940_v32  ;;  %906 = vmatprep.subr.mxu0 %v1029_v8 }
 0x390   :  { %894 = vmatmul.mubr.msk.f32.vlgmr.msra.gmra.mrb[4].mxu1 %vm293_vm3, %v315_v41  ;;  %899 = vmatmul.mubr.msk.f32.vlgmr.msra.gmra.mrb[4].mxu0 %vm141_vm2, %v469_v42 }
 0x391   :  { %902 = vmatpush3.xpose.msk.msra.mxu1 %vm141_vm2, %v549_v35  ;;  %903 = vmatprep.mubr.msk.f32.mxu1 %vm1030_vm1, %v1029_v8 }
 0x392   :  { %911 = vmatprep.subr.mxu1 %v1029_v8  ;;  %908 = vmatprep.mubr.msk.f32.mxu0 %vm1030_vm1, %v1029_v8 }
 0x394   :  { %904 = vmatmul.mubr.msk.f32.vlgmr.msra.gmra.mrb[6].mxu1 %vm141_vm2, %v547_v43 }
 0x395   :  { %913 = vmatprep.mubr.msk.f32.mxu1 %vm1030_vm1, %v1029_v8 }
 0x45f   :  { %v388_v44 = vpop.f32.mrb[2].mxu0 }
 0x460   :  { %v890_v45 = vpop.f32.mrb[3].mxu0 }
 0x463   :  { %v464_v46 = vpop.f32.mrb[4].mxu1  ;;  %v542_v47 = vpop.f32.mrb[4].mxu0 }
 0x464   :  { %v895_v48 = vpop.f32.mrb[5].mxu1  ;;  %v900_v49 = vpop.f32.mrb[5].mxu0  ;;  %v624_v50 = vsel %vm293_vm3, %v542_v47, -inf }
 0x465   :  { %625 = vmax.xlane.f32.xlu1 %v624_v50 }
 0x467   :  { %v620_v51 = vpop.f32.mrb[6].mxu1 }
 0x468   :  { %v905_v52 = vpop.f32.mrb[7].mxu1  ;;  %v627_v53 = vsel %vm293_vm3, %v620_v51, -inf }
 0x469   :  { %628 = vmax.xlane.f32.xlu0 %v627_v53 }
 0x47f   :  { %722 = vrot.lane.b32.xlu0 %v1102_v13, %s1035_s14 }
 0x4f2   :  { %v626_v54 = vpop.xlane.xlu1 %625 }
 0x4f3   :  { %v630_v55 = vsub.f32 %v542_v47, %v626_v54 }
 0x4f5   :  { %v632_v56 = vmul.f32 1.442695, %v630_v55 }
 0x4f6   :  { %v629_v57 = vpop.xlane.xlu0 %628 }
 0x4f7   :  { %945 = vpow2.f32 %v632_v56  ;;  %v631_v58 = vsub.f32 %v620_v51, %v629_v57 }
 0x4f9   :  { %v634_v59 = vmul.f32 1.442695, %v631_v58 }
 0x4fa   :  { %v723_v60 = vpop.permute.xlu0 %722 }
 0x4fb   :  { %947 = vpow2.f32 %v634_v59  ;;  %912 = vmatpush3.msra.mxu1 %v723_v60 }
 0x501   :  { %v946_v61 = vpop.eup %945 }
 0x502   :  { %v636_v62 = vsel %vm293_vm3, %v946_v61, 0.0 }
 0x503   :  { %637 = vadd.xlane.f32.xlu1 %v636_v62 }
 0x505   :  { %v948_v63 = vpop.eup %947 }
 0x506   :  { %v639_v0 = vsel %vm293_vm3, %v948_v63, 0.0 }
 0x507   :  { %640 = vadd.xlane.f32.xlu1 %v639_v0 }
 0x518   :  { %646 = vrot.lane.b32.xlu1 %v1099_v12, %s1035_s14 }
 0x590   :  { %v638_v1 = vpop.xlane.xlu1 %637 }
 0x591   :  { %949 = vrcp.f32 %v638_v1 }
 0x594   :  { %v641_v2 = vpop.xlane.xlu1 %640 }
 0x595   :  { %951 = vrcp.f32 %v641_v2 }
 0x598   :  { %v647_v3 = vpop.permute.xlu1 %646 }
 0x599   :  { %907 = vmatpush3.msra.mxu0 %v647_v3 }
 0x59b   :  { %v950_v4 = vpop.eup %949 }
 0x59c   :  { %v643_v5 = vmul.f32 %v950_v4, %v946_v61 }
 0x59e   :  { %909 = vmatmul.mubr.msk.f32.vlgmr.msra.gmra.mrb[6].mxu0 %vm293_vm3, %v643_v5 }
 0x59f   :  { %v952_v6 = vpop.eup %951 }
 0x5a0   :  { %v645_v7 = vmul.f32 %v952_v6, %v948_v63 }
 0x5a2   :  { %914 = vmatmul.mubr.msk.f32.vlgmr.msra.gmra.mrb[8].mxu1 %vm293_vm3, %v645_v7 }
 0x671   :  { %v718_v8 = vpop.f32.mrb[6].mxu0 }
 0x672   :  { %800 = vrot.lane.b32.xlu1 %v718_v8, %s1036_s15  ;;  %v910_v9 = vpop.f32.mrb[7].mxu0 }
 0x675   :  { %v794_v10 = vpop.f32.mrb[8].mxu1 }
 0x676   :  { %802 = vrot.lane.b32.xlu1 %v794_v10, %s1036_s15  ;;  %v915_v11 = vpop.f32.mrb[9].mxu1 }
 0x6e4   :  { %v801_v12 = vpop.permute.xlu1 %800 }
 0x6e5   :  { %v806_v13 = vsel %vm141_vm2, %v388_v44, %v801_v12 }
 0x6e6   :  { %808 = vst.msk [vmem:[#allocation7] sm:$0xff] %vm56_vm0, %v806_v13 }
 0x6e8   :  { %v803_v14 = vpop.permute.xlu1 %802 }
 0x6e9   :  { %v807_v15 = vsel %vm141_vm2, %v464_v46, %v803_v14 }
 0x6ea   :  { %809 = vst.msk [vmem:[#allocation7 + $0x8] sm:$0xff] %vm56_vm0, %v807_v15 }
 0x6eb   :  { %1008 = shalt.err (!%p1005_p6)
}
 0x6ec   :  { %s1009_s21 = scalar_lea.hbm %s1175_s3, 256 }
 0x6ed   :  { %p1010_p7 = scmp.ne.s32.totalorder %s1175_s3, %s1009_s21  ;;  %p1013_p8 = scmp.lt.u32.totalorder %s1009_s21, %s1175_s3 }
 0x6ef   :  { %p1015_p9 = pnand %p1013_p8, %p1010_p7 }
 0x6f1   :  { %1018 = shalt.err (!%p1015_p9)
}
 0x6f2   :  { %821 = dma.vmem_to_hbm [thread:$0]  %s816_s17, 256, %s1175_s3, [#allocation4], %s1026_s22, %s1026_s22, %s1027_s23  }
 0x6f3   :  { %1023 = dma.done.wait [#allocation4], 256  }
 0x6f4   :  { %1024 = vsyncadd [#allocation4], 4294967040 }
 0x6f5   :  { %825 = vsyncpa [#allocation3], 1 }
 0x6f6   :  { %826 = vsyncpa [#allocation6], 1 }
 0x6f7   :  { %827 = vsyncpa [#allocation4], 1 }

// kernel: tpu_custom_call.1
= control target key start
LH: loop header
LB: loop body
LE: loop exit
PB: predicated region body
PF: predicated region fallthrough
CT: control target
= control target key end

     0   :  { %8 = vsyncpa [#allocation3], 0  ;;  %s1172_s0 = inlined_call_operand.hbm [shape: f32[2,8,32], index: 0, kind: input, shape index: {}]   ;;  %s1173_s1 = inlined_call_operand.hbm [shape: f32[32,96], index: 1, kind: input, shape index: {}]   ;;  %s1174_s2 = inlined_call_operand.vmem [shape: f32[1,96], index: 2, kind: input, shape index: {}]   ;;  %s1175_s3 = inlined_call_operand.hbm [shape: f32[2,8,32], index: 3, kind: output, shape index: {}]  }
   0x1   :  { %9 = vsyncpa [#allocation6], 0 }
   0x2   :  { %10 = vsyncpa [#allocation4], 0  ;;  %s1025_s12 = smov [#allocation2]   ;;  %s953_s16 = scalar_lea.hbm %s1172_s0, 256 }
   0x3   :  { %s16_s13 = sshll.u32 %s1025_s12, 4  ;;  %p954_p0 = scmp.ne.s32.totalorder %s1172_s0, %s953_s16  ;;  %s17_s13 = int_to_ptr.vmem [resolvable:$true] %s16_s13 }
   0x4   :  { %p957_p1 = scmp.lt.u32.totalorder %s953_s16, %s1172_s0 }
   0x6   :  { %p959_p2 = pnand %p957_p1, %p954_p0 }
   0x8   :  { %962 = shalt.err (!%p959_p2)
}
   0x9   :  { %s963_s21 = scalar_lea.vmem %s17_s13, 256  ;;  %p968_p4 = scmp.lt.s32.totalorder %s17_s13, %s17_s13 }
   0xa   :  { %p964_p3 = scmp.ne.s32.totalorder %s17_s13, %s963_s21  ;;  %p969_p5 = scmp.lt.s32.totalorder %s963_s21, %s963_s21 }
   0xc   :  { %p970_p6 = por %p969_p5, %p968_p4 }
   0xe   :  { %p971_p7 = pnand %p970_p6, %p964_p3 }
  0x10   :  { %974 = shalt.err (!%p971_p7)
}
  0x11   :  { %s1026_s22 = smov 128   ;;  %s1027_s23 = smov 8  }
  0x12   :  { %22 = dma.hbm_to_vmem [thread:$0]  %s1172_s0, 256, %s17_s13, [#allocation3], %s1026_s22, %s1026_s22, %s1027_s23  }
  0x13   :  { %s1028_s26 = smov [#allocation5]   ;;  %s975_s30 = scalar_lea.hbm %s1173_s1, 512 }
  0x14   :  { %s28_s27 = sshll.u32 %s1028_s26, 4  ;;  %p976_p8 = scmp.ne.s32.totalorder %s1173_s1, %s975_s30  ;;  %s29_s27 = int_to_ptr.vmem [resolvable:$true] %s28_s27 }
  0x15   :  { %p979_p9 = scmp.lt.u32.totalorder %s975_s30, %s1173_s1 }
  0x17   :  { %p981_p10 = pnand %p979_p9, %p976_p8 }
  0x19   :  { %984 = shalt.err (!%p981_p10)
}
  0x1a   :  { %s985_s8 = scalar_lea.vmem %s29_s27, 512  ;;  %p990_p12 = scmp.lt.s32.totalorder %s29_s27, %s29_s27 }
  0x1b   :  { %p986_p11 = scmp.ne.s32.totalorder %s29_s27, %s985_s8  ;;  %p991_p13 = scmp.lt.s32.totalorder %s985_s8, %s985_s8 }
  0x1d   :  { %p992_p0 = por %p991_p13, %p990_p12 }
  0x1f   :  { %p993_p1 = pnand %p992_p0, %p986_p11 }
  0x21   :  { %996 = shalt.err (!%p993_p1)
}
  0x22   :  { %34 = dma.hbm_to_vmem [thread:$0]  %s1173_s1, 512, %s29_s27, [#allocation6], %s1026_s22, %s1026_s22, %s1027_s23  }
  0x23   :  { %1019 = dma.done.wait [#allocation3], 256  }
  0x24   :  { %1020 = vsyncadd [#allocation3], 4294967040 }
  0x25   :  { %1021 = dma.done.wait [#allocation6], 512  }
  0x26   :  { %1022 = vsyncadd [#allocation6], 4294966784  ;;  %vm56_vm0 = vcmask 261120   ;;  %v45_v0 = vld [vmem:[#allocation5] sm:$0xff]  ;;  %v46_v1 = vld [vmem:[#allocation5 + $0x8] sm:$0xff]  ;;  %v1029_v8 = vmov 0.0  }
  0x27   :  { %v47_v2 = vld [vmem:[#allocation5 + $0x10] sm:$0xff]  ;;  %v916_v3 = vpack.c.bf16 %v46_v1, %v45_v0  ;;  %v48_v4 = vld [vmem:[#allocation5 + $0x18] sm:$0xff]  ;;  %876 = vmatprep.subr.mxu1 %v1029_v8  ;;  %vm1030_vm1 = vmmov 0   ;;  %s1031_s11 = smov 96   ;;  %vm141_vm2 = vcmask 130048   ;;  %vm293_vm3 = vcmask 64512  }
  0x28   :  { %v43_v5 = vld [vmem:[#allocation2] sm:$0xff]  ;;  %v920_v6 = vpack.c.bf16 %v48_v4, %v47_v2  ;;  %v44_v7 = vld [vmem:[#allocation2 + $0x8] sm:$0xff]  ;;  %878 = vmatprep.mubr.msk.f32.mxu1 %vm1030_vm1, %v1029_v8  ;;  %s1033_s12 = smov 80   ;;  %s1034_s13 = smov 112  }
  0x29   :  { %873 = vmatprep.mubr.msk.f32.mxu0 %vm56_vm0, %v43_v5  ;;  %917 = vmatprep.subr.bf16.mxu0 %v916_v3  ;;  %v828_v9 = vld [vmem:[%s1174_s2] ss:$0 sm:$0xff]  ;;  %s1032_s2 = smov 64   ;;  %s1035_s14 = smov 48  }
  0x2a   :  { %919 = vmatpush3.bf16.msra.mxu0 %v916_v3  ;;  %s1036_s15 = smov 16   ;;  %s1037_s16 = smov [#allocation7]  }
  0x2b   :  { %921 = vmatprep.subr.bf16.mxu0 %v920_v6  ;;  %s815_s17 = sshll.u32 %s1037_s16, 4  ;;  %s816_s17 = int_to_ptr.vmem [resolvable:$true] %s815_s17 }
  0x2c   :  { %s997_s18 = scalar_lea.vmem %s816_s17, 256  ;;  %p1002_p3 = scmp.lt.s32.totalorder %s816_s17, %s816_s17 }
  0x2d   :  { %p998_p2 = scmp.ne.s32.totalorder %s816_s17, %s997_s18  ;;  %p1003_p4 = scmp.lt.s32.totalorder %s997_s18, %s997_s18 }
  0x2e   :  { %923 = vmatpush3.bf16.msra.mxu0 %v920_v6 }
  0x2f   :  { %886 = vmatprep.subr.mxu0 %v1029_v8  ;;  %p1004_p5 = por %p1003_p4, %p1002_p3 }
  0x31   :  { %874 = vmatmul.mubr.msk.f32.vlgmr.msra.gmra.mrb[0].mxu0 %vm56_vm0, %v44_v7  ;;  %p1005_p6 = pnand %p1004_p5, %p998_p2 }
  0x32   :  { %888 = vmatprep.mubr.msk.f32.mxu0 %vm1030_vm1, %v1029_v8 }
 0x104   :  { %v875_v10 = vpop.f32.mrb[0].mxu0 }
 0x105   :  { %v129_v11 = vpop.f32.mrb[1].mxu0  ;;  %v1102_v13 = vadd.f32 %v875_v10, %v828_v9 }
 0x106   :  { %v1099_v12 = vadd.f32 %v828_v9, %v129_v11 }
 0x108   :  { %139 = vrot.lane.b32.xlu0 %v1099_v12, %s1031_s11 }
 0x10c   :  { %217 = vrot.lane.b32.xlu0 %v1102_v13, %s1031_s11 }
 0x17a   :  { %v140_v14 = vpop.permute.xlu0 %139 }
 0x17b   :  { %877 = vmatpush3.xpose.msk.msra.mxu1 %vm141_vm2, %v140_v14 }
 0x17c   :  { %881 = vmatprep.subr.mxu1 %v1029_v8 }
 0x17e   :  { %879 = vmatmul.mubr.msk.f32.vlgmr.msra.gmra.mrb[0].mxu1 %vm141_vm2, %v1099_v12  ;;  %v218_v15 = vpop.permute.xlu0 %217 }
 0x17f   :  { %882 = vmatpush3.xpose.msk.msra.mxu1 %vm141_vm2, %v218_v15  ;;  %883 = vmatprep.mubr.msk.f32.mxu1 %vm1030_vm1, %v1029_v8 }
 0x180   :  { %891 = vmatprep.subr.mxu1 %v1029_v8 }
 0x182   :  { %884 = vmatmul.mubr.msk.f32.vlgmr.msra.gmra.mrb[2].mxu1 %vm141_vm2, %v1102_v13 }
 0x183   :  { %893 = vmatprep.mubr.msk.f32.mxu1 %vm1030_vm1, %v1029_v8 }
 0x251   :  { %v212_v16 = vpop.f32.mrb[0].mxu1 }
 0x252   :  { %v880_v17 = vpop.f32.mrb[1].mxu1  ;;  %v294_v18 = vsel %vm293_vm3, %v212_v16, -inf }
 0x253   :  { %295 = vmax.xlane.f32.xlu1 %v294_v18 }
 0x255   :  { %v289_v19 = vpop.f32.mrb[2].mxu1 }
 0x256   :  { %v885_v20 = vpop.f32.mrb[3].mxu1  ;;  %v297_v21 = vsel %vm293_vm3, %v289_v19, -inf }
 0x257   :  { %298 = vmax.xlane.f32.xlu1 %v297_v21 }
 0x268   :  { %316 = vrot.lane.b32.xlu1 %v1099_v12, %s1032_s2 }
 0x26c   :  { %392 = vrot.lane.b32.xlu1 %v1102_v13, %s1032_s2 }
 0x270   :  { %470 = vrot.lane.b32.xlu1 %v1099_v12, %s1033_s12 }
 0x274   :  { %548 = vrot.lane.b32.xlu1 %v1102_v13, %s1033_s12 }
 0x2e0   :  { %v296_v22 = vpop.xlane.xlu1 %295 }
 0x2e1   :  { %v300_v23 = vsub.f32 %v212_v16, %v296_v22 }
 0x2e3   :  { %v302_v24 = vmul.f32 1.442695, %v300_v23 }
 0x2e4   :  { %v299_v25 = vpop.xlane.xlu1 %298 }
 0x2e5   :  { %937 = vpow2.f32 %v302_v24  ;;  %v301_v26 = vsub.f32 %v289_v19, %v299_v25 }
 0x2e7   :  { %v304_v27 = vmul.f32 1.442695, %v301_v26 }
 0x2e8   :  { %v317_v28 = vpop.permute.xlu1 %316 }
 0x2e9   :  { %939 = vpow2.f32 %v304_v27  ;;  %887 = vmatpush3.msra.mxu0 %v317_v28 }
 0x2ea   :  { %896 = vmatprep.subr.mxu0 %v1029_v8 }
 0x2ec   :  { %v393_v29 = vpop.permute.xlu1 %392 }
 0x2ed   :  { %892 = vmatpush3.msra.mxu1 %v393_v29 }
 0x2ee   :  { %901 = vmatprep.subr.mxu1 %v1029_v8 }
 0x2ef   :  { %v938_v30 = vpop.eup %937 }
 0x2f0   :  { %v306_v31 = vsel %vm293_vm3, %v938_v30, 0.0  ;;  %v471_v34 = vpop.permute.xlu1 %470 }
 0x2f1   :  { %307 = vadd.xlane.f32.xlu0 %v306_v31 }
 0x2f3   :  { %v940_v32 = vpop.eup %939 }
 0x2f4   :  { %v309_v33 = vsel %vm293_vm3, %v940_v32, 0.0  ;;  %v549_v35 = vpop.permute.xlu1 %548 }
 0x2f5   :  { %310 = vadd.xlane.f32.xlu1 %v309_v33 }
 0x306   :  { %546 = vrot.lane.b32.xlu1 %v1102_v13, %s1034_s13 }
 0x307   :  { %468 = vrot.lane.b32.xlu0 %v1099_v12, %s1034_s13 }
 0x37e   :  { %v308_v36 = vpop.xlane.xlu0 %307 }
 0x37f   :  { %941 = vrcp.f32 %v308_v36 }
 0x382   :  { %v311_v37 = vpop.xlane.xlu1 %310  ;;  %v469_v42 = vpop.permute.xlu0 %468 }
 0x383   :  { %943 = vrcp.f32 %v311_v37 }
 0x386   :  { %v547_v43 = vpop.permute.xlu1 %546 }
 0x389   :  { %v942_v38 = vpop.eup %941 }
 0x38a   :  { %v313_v39 = vmul.f32 %v942_v38, %v938_v30 }
 0x38c   :  { %889 = vmatmul.mubr.msk.f32.vlgmr.msra.gmra.mrb[2].mxu0 %vm293_vm3, %v313_v39 }
 0x38d   :  { %v944_v40 = vpop.eup %943  ;;  %897 = vmatpush3.xpose.msk.msra.mxu0 %vm141_vm2, %v471_v34  ;;  %898 = vmatprep.mubr.msk.f32.mxu0 %vm1030_vm1, %v1029_v8 }
 0x38e   :  { %v315_v41 = vmul.f32 %v944_v40, %v940_v32  ;;  %906 = vmatprep.subr.mxu0 %v1029_v8 }
 0x390   :  { %894 = vmatmul.mubr.msk.f32.vlgmr.msra.gmra.mrb[4].mxu1 %vm293_vm3, %v315_v41  ;;  %899 = vmatmul.mubr.msk.f32.vlgmr.msra.gmra.mrb[4].mxu0 %vm141_vm2, %v469_v42 }
 0x391   :  { %902 = vmatpush3.xpose.msk.msra.mxu1 %vm141_vm2, %v549_v35  ;;  %903 = vmatprep.mubr.msk.f32.mxu1 %vm1030_vm1, %v1029_v8 }
 0x392   :  { %911 = vmatprep.subr.mxu1 %v1029_v8  ;;  %908 = vmatprep.mubr.msk.f32.mxu0 %vm1030_vm1, %v1029_v8 }
 0x394   :  { %904 = vmatmul.mubr.msk.f32.vlgmr.msra.gmra.mrb[6].mxu1 %vm141_vm2, %v547_v43 }
 0x395   :  { %913 = vmatprep.mubr.msk.f32.mxu1 %vm1030_vm1, %v1029_v8 }
 0x45f   :  { %v388_v44 = vpop.f32.mrb[2].mxu0 }
 0x460   :  { %v890_v45 = vpop.f32.mrb[3].mxu0 }
 0x463   :  { %v464_v46 = vpop.f32.mrb[4].mxu1  ;;  %v542_v47 = vpop.f32.mrb[4].mxu0 }
 0x464   :  { %v895_v48 = vpop.f32.mrb[5].mxu1  ;;  %v900_v49 = vpop.f32.mrb[5].mxu0  ;;  %v624_v50 = vsel %vm293_vm3, %v542_v47, -inf }
 0x465   :  { %625 = vmax.xlane.f32.xlu1 %v624_v50 }
 0x467   :  { %v620_v51 = vpop.f32.mrb[6].mxu1 }
 0x468   :  { %v905_v52 = vpop.f32.mrb[7].mxu1  ;;  %v627_v53 = vsel %vm293_vm3, %v620_v51, -inf }
 0x469   :  { %628 = vmax.xlane.f32.xlu0 %v627_v53 }
 0x47f   :  { %722 = vrot.lane.b32.xlu0 %v1102_v13, %s1035_s14 }
 0x4f2   :  { %v626_v54 = vpop.xlane.xlu1 %625 }
 0x4f3   :  { %v630_v55 = vsub.f32 %v542_v47, %v626_v54 }
 0x4f5   :  { %v632_v56 = vmul.f32 1.442695, %v630_v55 }
 0x4f6   :  { %v629_v57 = vpop.xlane.xlu0 %628 }
 0x4f7   :  { %945 = vpow2.f32 %v632_v56  ;;  %v631_v58 = vsub.f32 %v620_v51, %v629_v57 }
 0x4f9   :  { %v634_v59 = vmul.f32 1.442695, %v631_v58 }
 0x4fa   :  { %v723_v60 = vpop.permute.xlu0 %722 }
 0x4fb   :  { %947 = vpow2.f32 %v634_v59  ;;  %912 = vmatpush3.msra.mxu1 %v723_v60 }
 0x501   :  { %v946_v61 = vpop.eup %945 }
 0x502   :  { %v636_v62 = vsel %vm293_vm3, %v946_v61, 0.0 }
 0x503   :  { %637 = vadd.xlane.f32.xlu1 %v636_v62 }
 0x505   :  { %v948_v63 = vpop.eup %947 }
 0x506   :  { %v639_v0 = vsel %vm293_vm3, %v948_v63, 0.0 }
 0x507   :  { %640 = vadd.xlane.f32.xlu1 %v639_v0 }
 0x518   :  { %646 = vrot.lane.b32.xlu1 %v1099_v12, %s1035_s14 }
 0x590   :  { %v638_v1 = vpop.xlane.xlu1 %637 }
 0x591   :  { %949 = vrcp.f32 %v638_v1 }
 0x594   :  { %v641_v2 = vpop.xlane.xlu1 %640 }
 0x595   :  { %951 = vrcp.f32 %v641_v2 }
 0x598   :  { %v647_v3 = vpop.permute.xlu1 %646 }
 0x599   :  { %907 = vmatpush3.msra.mxu0 %v647_v3 }
 0x59b   :  { %v950_v4 = vpop.eup %949 }
 0x59c   :  { %v643_v5 = vmul.f32 %v950_v4, %v946_v61 }
 0x59e   :  { %909 = vmatmul.mubr.msk.f32.vlgmr.msra.gmra.mrb[6].mxu0 %vm293_vm3, %v643_v5 }
 0x59f   :  { %v952_v6 = vpop.eup %951 }
 0x5a0   :  { %v645_v7 = vmul.f32 %v952_v6, %v948_v63 }
 0x5a2   :  { %914 = vmatmul.mubr.msk.f32.vlgmr.msra.gmra.mrb[8].mxu1 %vm293_vm3, %v645_v7 }
 0x671   :  { %v718_v8 = vpop.f32.mrb[6].mxu0 }
 0x672   :  { %800 = vrot.lane.b32.xlu1 %v718_v8, %s1036_s15  ;;  %v910_v9 = vpop.f32.mrb[7].mxu0 }
 0x675   :  { %v794_v10 = vpop.f32.mrb[8].mxu1 }
 0x676   :  { %802 = vrot.lane.b32.xlu1 %v794_v10, %s1036_s15  ;;  %v915_v11 = vpop.f32.mrb[9].mxu1 }
 0x6e4   :  { %v801_v12 = vpop.permute.xlu1 %800 }
 0x6e5   :  { %v806_v13 = vsel %vm141_vm2, %v388_v44, %v801_v12 }
 0x6e6   :  { %808 = vst.msk [vmem:[#allocation7] sm:$0xff] %vm56_vm0, %v806_v13 }
 0x6e8   :  { %v803_v14 = vpop.permute.xlu1 %802 }
 0x6e9   :  { %v807_v15 = vsel %vm141_vm2, %v464_v46, %v803_v14 }
 0x6ea   :  { %809 = vst.msk [vmem:[#allocation7 + $0x8] sm:$0xff] %vm56_vm0, %v807_v15 }
 0x6eb   :  { %1008 = shalt.err (!%p1005_p6)
}
 0x6ec   :  { %s1009_s21 = scalar_lea.hbm %s1175_s3, 256 }
 0x6ed   :  { %p1010_p7 = scmp.ne.s32.totalorder %s1175_s3, %s1009_s21  ;;  %p1013_p8 = scmp.lt.u32.totalorder %s1009_s21, %s1175_s3 }
 0x6ef   :  { %p1015_p9 = pnand %p1013_p8, %p1010_p7 }
 0x6f1   :  { %1018 = shalt.err (!%p1015_p9)
}
 0x6f2   :  { %821 = dma.vmem_to_hbm [thread:$0]  %s816_s17, 256, %s1175_s3, [#allocation4], %s1026_s22, %s1026_s22, %s1027_s23  }
 0x6f3   :  { %1023 = dma.done.wait [#allocation4], 256  }
 0x6f4   :  { %1024 = vsyncadd [#allocation4], 4294967040 }
 0x6f5   :  { %825 = vsyncpa [#allocation3], 1 }
 0x6f6   :  { %826 = vsyncpa [#allocation6], 1 }
 0x6f7   :  { %827 = vsyncpa [#allocation4], 1 }

</bundles_post_ra>
